<compile_context>
chip_gen: v5e
topology: v5e:2x2
jax: 0.10.0
libtpu: 0.0.40
codegen_flags: <defaults>
</compile_context>

<pallas_src>
import functools

import jax
import jax.numpy as jnp
from jax import lax
from jax.experimental import pallas as pl
from jax.experimental.pallas import tpu as pltpu

_H1 = 128  # hidden width of layer 1
_H2 = 64   # hidden width of layer 2


def _cdiv(a, b):
    return (a + b - 1) // b


def _round_up(n, m):
    return ((n + m - 1) // m) * m


def _choose_tiling(B, tile_cap, min_tiles):
    """Pick (TB, num_tiles, padded_B) with TB a multiple of 8, TB <= tile_cap.

    Prefers tilings where TB divides B exactly so no jnp.pad copy of x is
    needed; falls back to minimal (< 8*num_tiles rows) padding otherwise.
    """
    tile_cap = max(8, (tile_cap // 8) * 8)
    base_tiles = max(min_tiles, _cdiv(B, tile_cap))

    if B % 8 == 0:
        hi = min(base_tiles + 64, max(B // 8, 1))
        for nt in range(base_tiles, hi + 1):
            tb = B // nt
            if B % nt == 0 and tb % 8 == 0 and tb <= tile_cap:
                return tb, nt, B

    nt = base_tiles
    tb = _round_up(_cdiv(B, nt), 8)
    return tb, nt, tb * nt


def _ebm_mlp_kernel(x_ref, w1_ref, b1_ref, w2_ref, b2_ref, w3_ref, b3_ref,
                    o_ref, *, bf16_matmul):
    """Fused 3-layer MLP energy network for one batch tile.

    x_ref : (TB, D)    native dtype (batch on sublanes, features on lanes)
    w1    : (D, 128)   b1 : (1, 128)
    w2    : (128, 64)  b2 : (1, 64)
    w3    : (1, 64)    b3 : (1, 1)     (third layer stored as a row)
    o_ref : (1, 1, TB) f32  lane-dense energies for this tile
    """
    x = x_ref[...]

    if bf16_matmul:
        # Single-pass bf16 MXU ops, f32 accumulation.
        x = x.astype(jnp.bfloat16)
        w1 = w1_ref[...].astype(jnp.bfloat16)
        w2 = w2_ref[...].astype(jnp.bfloat16)
        mm_prec = lax.Precision.DEFAULT
    else:
        # Pin f32-equivalent multi-pass MXU precision to match torch numerics.
        x = x.astype(jnp.float32)
        w1 = w1_ref[...]
        w2 = w2_ref[...]
        mm_prec = lax.Precision.HIGHEST

    h1 = jnp.dot(x, w1, preferred_element_type=jnp.float32,
                 precision=mm_prec) + b1_ref[...]
    h1 = jnp.maximum(h1, 0.0)
    if bf16_matmul:
        h1 = h1.astype(jnp.bfloat16)

    h2 = jnp.dot(h1, w2, preferred_element_type=jnp.float32,
                 precision=mm_prec) + b2_ref[...]
    h2 = jnp.maximum(h2, 0.0)

    # Layer 3: contract the (1, 64) weight row against h2's feature (lane)
    # axis -- trans_b pattern (same dimension numbers the MXU handles natively
    # for q @ k.T), so the result lands as a lane-dense (1, TB) row without an
    # XLU transpose of the (TB, 64) activation.
    e = lax.dot_general(
        w3_ref[...], h2,
        dimension_numbers=(((1,), (1,)), ((), ())),
        preferred_element_type=jnp.float32,
        precision=lax.Precision.HIGHEST,
    ) + b3_ref[...]                                  # (1, TB)

    o_ref[...] = e[None].astype(o_ref.dtype)         # (1, 1, TB)


def ebmwld_forward(x, params, *, tile_b=8192, stream_bf16=False):
    """JAX wrapper reproducing EBMwLD.forward semantics.

    x: any shape that squeezes to (B, D) (e.g. (B, 1, D) windows).
    Returns: energies of shape (B,) (scalar for a single sample), matching
    the trailing torch .squeeze().
    """
    w1, b1, w2, b2, w3_row, b3 = params

    xs = jnp.squeeze(x)                 # mirrors torch x.squeeze()
    if xs.ndim == 1:                    # single-sample case -> (1, D)
        xs = xs[None, :]
    B, D = xs.shape
    assert D == w1.shape[0], (D, w1.shape)
    assert D > 1, "degenerate squeeze: n_features*window_size must be > 1"

    # Optional bf16 streaming of x (halves B-scaling HBM traffic; changes
    # forward numerics, so off by default).
    if stream_bf16 and xs.dtype != jnp.bfloat16:
        xs = xs.astype(jnp.bfloat16)
    bf16_matmul = bool(stream_bf16)
    # Note: non-f32 inputs are NOT upcast here; the kernel casts post-DMA.

    # Batch tile: multiple of 8 sublanes; VMEM-aware cap keeps
    # x double-buffer + h1 + h2 comfortably under the default scoped VMEM.
    itemsize = jnp.dtype(xs.dtype).itemsize
    per_row_bytes = 2 * D * itemsize + (_H1 + _H2) * 4 + 64
    vmem_budget = 20 << 20
    tile_cap = max(8, min(tile_b, ((vmem_budget // per_row_bytes) // 8) * 8))

    min_tiles = 2 if B >= 256 else 1    # let both v7x TCs get work
    TB, num_tiles, Bp = _choose_tiling(B, tile_cap, min_tiles)
    if Bp != B:
        xs = jnp.pad(xs, ((0, Bp - B), (0, 0)))

    def const(shape):                   # resident weight/bias block
        return pl.BlockSpec(shape, lambda i: (0, 0))

    kernel = functools.partial(_ebm_mlp_kernel, bf16_matmul=bf16_matmul)

    out = pl.pallas_call(
        kernel,
        out_shape=jax.ShapeDtypeStruct((num_tiles, 1, TB), jnp.float32),
        grid=(num_tiles,),
        in_specs=[
            pl.BlockSpec((TB, D), lambda i: (i, 0)),     # x: pipelined per tile
            const((D, _H1)), const((1, _H1)),            # w1, b1
            const((_H1, _H2)), const((1, _H2)),          # w2, b2
            const((1, _H2)), const((1, 1)),              # w3 (row), b3
        ],
        out_specs=pl.BlockSpec((1, 1, TB), lambda i: (i, 0, 0)),
        compiler_params=pltpu.CompilerParams(
            dimension_semantics=("parallel",)),
    )(xs, w1, b1, w2, b2, w3_row, b3)

    energies = out.reshape(-1)[:B]
    return jnp.squeeze(energies)        # mirrors trailing .squeeze()


def init_params(key, n_features=1, window_size=64):
    """nn.Linear-style init: U[-1/sqrt(fan_in), 1/sqrt(fan_in)].

    Weights stored as (in_dim, out_dim); the third layer is stored as a
    (1, 64) row so the kernel can emit lane-dense energies.
    """
    d_in = n_features * window_size
    k1w, k1b, k2w, k2b, k3w, k3b = jax.random.split(key, 6)

    def lin(kw, kb, fan_in, fan_out):
        bound = 1.0 / (fan_in ** 0.5)
        w = jax.random.uniform(kw, (fan_in, fan_out), jnp.float32, -bound, bound)
        b = jax.random.uniform(kb, (1, fan_out), jnp.float32, -bound, bound)
        return w, b

    w1, b1 = lin(k1w, k1b, d_in, _H1)
    w2, b2 = lin(k2w, k2b, _H1, _H2)
    w3, b3 = lin(k3w, k3b, _H2, 1)
    return (w1, b1, w2, b2, w3.T, b3)   # w3 stored transposed: (1, 64)


if __name__ == "__main__":
    key = jax.random.PRNGKey(0)
    n_features, window_size = 1, 64
    D = n_features * window_size

    kp, kx = jax.random.split(key)
    params = init_params(kp, n_features, window_size)
    w1, b1, w2, b2, w3_row, b3 = params

    fwd_f32 = jax.jit(ebmwld_forward)
    fwd_bf16 = jax.jit(functools.partial(ebmwld_forward, stream_bf16=True))

    def ref_energy(xs):
        h = jnp.maximum(jnp.dot(xs, w1, precision=lax.Precision.HIGHEST) + b1, 0.0)
        h = jnp.maximum(jnp.dot(h, w2, precision=lax.Precision.HIGHEST) + b2, 0.0)
        return jnp.squeeze(jnp.dot(h, w3_row.T, precision=lax.Precision.HIGHEST) + b3)

    # Small batches; B=8 hits the zero-pad path, B=20 hits the ragged-tail
    # (minimal-pad) fallback. Windows shaped as the dataloader supplies them.
    for B in (8, 20):
        x = jax.random.normal(jax.random.fold_in(kx, B),
                              (B, 1, n_features * window_size), jnp.float32)

        energy = fwd_f32(x, params)
        jax.block_until_ready(energy)

        xs = jnp.squeeze(x)
        ref = ref_energy(xs)
        assert energy.shape == (B,), energy.shape
        assert jnp.allclose(energy, ref, atol=1e-4, rtol=1e-4), float(
            jnp.max(jnp.abs(energy - ref)))

        # bf16-streaming path (looser tolerance: numerics intentionally differ)
        energy_bf16 = fwd_bf16(x, params)
        jax.block_until_ready(energy_bf16)
        assert energy_bf16.shape == (B,), energy_bf16.shape
        assert jnp.allclose(energy_bf16, ref, atol=5e-2, rtol=5e-2), float(
            jnp.max(jnp.abs(energy_bf16 - ref)))

    # TODO(synk): langevin_dynamics / learn / predict / plot_results are
    # training & evaluation drivers (autograd, optimizer, plotting) outside
    # the forward pass and are not translated to Pallas.
    print("KERNEL_OK")
</pallas_src>

<mosaic_0001>
module attributes {stable_mosaic.version = 11 : i64} {
  func.func @_ebm_mlp_kernel(%arg0: i32, %arg1: memref<8x64xf32, #tpu.memory_space<vmem>>, %arg2: memref<64x128xf32, #tpu.memory_space<vmem>>, %arg3: memref<1x128xf32, #tpu.memory_space<vmem>>, %arg4: memref<128x64xf32, #tpu.memory_space<vmem>>, %arg5: memref<1x64xf32, #tpu.memory_space<vmem>>, %arg6: memref<1x64xf32, #tpu.memory_space<vmem>>, %arg7: memref<1x1xf32, #tpu.memory_space<vmem>>, %arg8: memref<1x1x8xf32, #tpu.memory_space<vmem>>) attributes {dimension_semantics = [#tpu.dimension_semantics<parallel>], iteration_bounds = array<i64: 1>, scalar_prefetch = 0 : i64, scratch_operands = 0 : i64, tpu.core_type = #tpu.core_type<tc>, window_params = [{transform_indices = @transform_0, window_bounds = array<i64: 8, 64>}, {pipeline_mode = #tpu.pipeline_mode<synchronous>, transform_indices = @transform_1, window_bounds = array<i64: 64, 128>}, {pipeline_mode = #tpu.pipeline_mode<synchronous>, transform_indices = @transform_2, window_bounds = array<i64: 1, 128>}, {pipeline_mode = #tpu.pipeline_mode<synchronous>, transform_indices = @transform_3, window_bounds = array<i64: 128, 64>}, {pipeline_mode = #tpu.pipeline_mode<synchronous>, transform_indices = @transform_4, window_bounds = array<i64: 1, 64>}, {pipeline_mode = #tpu.pipeline_mode<synchronous>, transform_indices = @transform_5, window_bounds = array<i64: 1, 64>}, {pipeline_mode = #tpu.pipeline_mode<synchronous>, transform_indices = @transform_6, window_bounds = array<i64: 1, 1>}, {transform_indices = @transform_7, window_bounds = array<i64: 1, 1, 8>}]} {
    %c0 = arith.constant 0 : index
    %c0_0 = arith.constant 0 : index
    %0 = vector.load %arg1[%c0, %c0_0] : memref<8x64xf32, #tpu.memory_space<vmem>>, vector<8x64xf32>
    %c0_1 = arith.constant 0 : index
    %c0_2 = arith.constant 0 : index
    %1 = vector.load %arg2[%c0_1, %c0_2] : memref<64x128xf32, #tpu.memory_space<vmem>>, vector<64x128xf32>
    %c0_3 = arith.constant 0 : index
    %c0_4 = arith.constant 0 : index
    %2 = vector.load %arg4[%c0_3, %c0_4] : memref<128x64xf32, #tpu.memory_space<vmem>>, vector<128x64xf32>
    %cst = arith.constant dense<0.000000e+00> : vector<8x128xf32>
    %3 = tpu.matmul %0, %1, %cst {dimension_numbers = #tpu.dot_dimension_numbers<[1], [0], [0], [1], [0, 0, 1, 1], [], []>, precision = #tpu.contract_precision<fp32>} : vector<8x64xf32>, vector<64x128xf32>, vector<8x128xf32> -> vector<8x128xf32>
    %c0_5 = arith.constant 0 : index
    %c0_6 = arith.constant 0 : index
    %4 = vector.load %arg3[%c0_5, %c0_6] : memref<1x128xf32, #tpu.memory_space<vmem>>, vector<1x128xf32>
    %5 = vector.broadcast %4 : vector<1x128xf32> to vector<8x128xf32>
    %6 = arith.addf %3, %5 : vector<8x128xf32>
    %cst_7 = arith.constant 0.000000e+00 : f32
    %7 = vector.broadcast %cst_7 : f32 to vector<8x128xf32>
    %8 = arith.maximumf %6, %7 : vector<8x128xf32>
    %cst_8 = arith.constant dense<0.000000e+00> : vector<8x64xf32>
    %9 = tpu.matmul %8, %2, %cst_8 {dimension_numbers = #tpu.dot_dimension_numbers<[1], [0], [0], [1], [0, 0, 1, 1], [], []>, precision = #tpu.contract_precision<fp32>} : vector<8x128xf32>, vector<128x64xf32>, vector<8x64xf32> -> vector<8x64xf32>
    %c0_9 = arith.constant 0 : index
    %c0_10 = arith.constant 0 : index
    %10 = vector.load %arg5[%c0_9, %c0_10] : memref<1x64xf32, #tpu.memory_space<vmem>>, vector<1x64xf32>
    %11 = vector.broadcast %10 : vector<1x64xf32> to vector<8x64xf32>
    %12 = arith.addf %9, %11 : vector<8x64xf32>
    %cst_11 = arith.constant 0.000000e+00 : f32
    %13 = vector.broadcast %cst_11 : f32 to vector<8x64xf32>
    %14 = arith.maximumf %12, %13 : vector<8x64xf32>
    %c0_12 = arith.constant 0 : index
    %c0_13 = arith.constant 0 : index
    %15 = vector.load %arg6[%c0_12, %c0_13] : memref<1x64xf32, #tpu.memory_space<vmem>>, vector<1x64xf32>
    %cst_14 = arith.constant dense<0.000000e+00> : vector<1x8xf32>
    %16 = tpu.matmul %15, %14, %cst_14 {dimension_numbers = #tpu.dot_dimension_numbers<[1], [1], [0], [0], [0, 0, 1, 0], [], []>, precision = #tpu.contract_precision<fp32>} : vector<1x64xf32>, vector<8x64xf32>, vector<1x8xf32> -> vector<1x8xf32>
    %c0_15 = arith.constant 0 : index
    %c0_16 = arith.constant 0 : index
    %17 = vector.load %arg7[%c0_15, %c0_16] : memref<1x1xf32, #tpu.memory_space<vmem>>, vector<1x1xf32>
    %18 = vector.broadcast %17 : vector<1x1xf32> to vector<1x8xf32>
    %19 = arith.addf %16, %18 : vector<1x8xf32>
    %20 = vector.shape_cast %19 : vector<1x8xf32> to vector<1x1x8xf32>
    %c0_17 = arith.constant 0 : index
    %c0_18 = arith.constant 0 : index
    %c0_19 = arith.constant 0 : index
    %21 = vector.load %arg8[%c0_17, %c0_18, %c0_19] : memref<1x1x8xf32, #tpu.memory_space<vmem>>, vector<1x1x8xf32>
    tpu.vector_store %arg8[%c0_17, %c0_18, %c0_19], %20 {strides = array<i32>} : memref<1x1x8xf32, #tpu.memory_space<vmem>>, vector<1x1x8xf32>,
    return
  }
  func.func @transform_0(%arg0: i32) -> (i32, i32) {
    %c0_i32 = arith.constant 0 : i32
    %c0_i32_0 = arith.constant 0 : i32
    return %arg0, %c0_i32 : i32, i32
  }
  func.func @transform_1(%arg0: i32) -> (i32, i32) {
    %c0_i32 = arith.constant 0 : i32
    %c0_i32_0 = arith.constant 0 : i32
    %c0_i32_1 = arith.constant 0 : i32
    return %c0_i32, %c0_i32_0 : i32, i32
  }
  func.func @transform_2(%arg0: i32) -> (i32, i32) {
    %c0_i32 = arith.constant 0 : i32
    %c0_i32_0 = arith.constant 0 : i32
    %c0_i32_1 = arith.constant 0 : i32
    return %c0_i32, %c0_i32_0 : i32, i32
  }
  func.func @transform_3(%arg0: i32) -> (i32, i32) {
    %c0_i32 = arith.constant 0 : i32
    %c0_i32_0 = arith.constant 0 : i32
    %c0_i32_1 = arith.constant 0 : i32
    return %c0_i32, %c0_i32_0 : i32, i32
  }
  func.func @transform_4(%arg0: i32) -> (i32, i32) {
    %c0_i32 = arith.constant 0 : i32
    %c0_i32_0 = arith.constant 0 : i32
    %c0_i32_1 = arith.constant 0 : i32
    return %c0_i32, %c0_i32_0 : i32, i32
  }
  func.func @transform_5(%arg0: i32) -> (i32, i32) {
    %c0_i32 = arith.constant 0 : i32
    %c0_i32_0 = arith.constant 0 : i32
    %c0_i32_1 = arith.constant 0 : i32
    return %c0_i32, %c0_i32_0 : i32, i32
  }
  func.func @transform_6(%arg0: i32) -> (i32, i32) {
    %c0_i32 = arith.constant 0 : i32
    %c0_i32_0 = arith.constant 0 : i32
    %c0_i32_1 = arith.constant 0 : i32
    return %c0_i32, %c0_i32_0 : i32, i32
  }
  func.func @transform_7(%arg0: i32) -> (i32, i32, i32) {
    %c0_i32 = arith.constant 0 : i32
    %c0_i32_0 = arith.constant 0 : i32
    %c0_i32_1 = arith.constant 0 : i32
    return %arg0, %c0_i32, %c0_i32_0 : i32, i32, i32
  }
}

</mosaic_0001>

<bundles_post_ra>
// kernel: ebmwld_forward.1
= control target key start
LH: loop header
LB: loop body
LE: loop exit
PB: predicated region body
PF: predicated region fallthrough
CT: control target
= control target key end

     0   :  { %s1356_s0 = inlined_call_operand.vmem [shape: f32[8,64], index: 0, kind: input, shape index: {}]   ;;  %s1357_s1 = inlined_call_operand.vmem [shape: f32[64,128], index: 1, kind: input, shape index: {}]   ;;  %s1358_s2 = inlined_call_operand.vmem [shape: f32[1,128], index: 2, kind: input, shape index: {}]   ;;  %s1359_s3 = inlined_call_operand.vmem [shape: f32[128,64], index: 3, kind: input, shape index: {}]   ;;  %s1360_s4 = inlined_call_operand.vmem [shape: f32[1,64], index: 4, kind: input, shape index: {}]   ;;  %s1361_s5 = inlined_call_operand.vmem [shape: f32[1,64], index: 5, kind: input, shape index: {}]   ;;  %s1362_s6 = inlined_call_operand.<no memory space> [shape: f32[1,1], index: 6, kind: input, shape index: {}]   ;;  %s1363_s7 = inlined_call_operand.hbm [shape: f32[1,1,8], index: 7, kind: output, shape index: {}]  }
   0x1   :  { %v12_v0 = vstv %s1362_s6 }
   0x2   :  { %13 = vst [vmem:[#allocation2] sm:$0x1] %v12_v0 }
   0x3   :  { %v37_v1 = vld [vmem:[%s1357_s1 + $0x38] sm:$0xff]  ;;  %v36_v2 = vld [vmem:[%s1357_s1 + $0x30] sm:$0xff]  ;;  %v35_v3 = vld [vmem:[%s1357_s1 + $0x28] sm:$0xff] }
   0x4   :  { %v909_v4 = vand.u32 4294901760, %v37_v1  ;;  %v911_v5 = vand.u32 4294901760, %v36_v2  ;;  %v913_v6 = vand.u32 4294901760, %v35_v3  ;;  %v34_v7 = vld [vmem:[%s1357_s1 + $0x20] sm:$0xff]  ;;  %v33_v8 = vld [vmem:[%s1357_s1 + $0x18] sm:$0xff]  ;;  %v32_v9 = vld [vmem:[%s1357_s1 + $0x10] sm:$0xff] }
   0x5   :  { %v924_v10 = vand.u32 4294901760, %v34_v7  ;;  %v926_v11 = vand.u32 4294901760, %v33_v8  ;;  %v928_v12 = vand.u32 4294901760, %v32_v9  ;;  %v31_v13 = vld [vmem:[%s1357_s1 + $0x8] sm:$0xff]  ;;  %v30_v14 = vld [vmem:[%s1357_s1] sm:$0xff] }
   0x6   :  { %71 = vmatpush.msra.mxu0 %v909_v4  ;;  %v938_v15 = vsub.f32 %v37_v1, %v909_v4  ;;  %v941_v16 = vsub.f32 %v36_v2, %v911_v5  ;;  %v944_v17 = vsub.f32 %v35_v3, %v913_v6  ;;  %203 = vmatpush.msra.mxu3 %v909_v4  ;;  %v947_v18 = vand.u32 4294901760, %v31_v13 }
   0x7   :  { %v950_v19 = vsub.f32 %v34_v7, %v924_v10  ;;  %v953_v20 = vsub.f32 %v33_v8, %v926_v11  ;;  %v956_v21 = vsub.f32 %v32_v9, %v928_v12  ;;  %v958_v22 = vand.u32 4294901760, %v30_v14 }
   0x8   :  { %14 = vsyncpa [#allocation4], 0  ;;  %73 = vmatpush.msra.mxu0 %v911_v5  ;;  %v105_v23 = vand.u32 4294901760, %v938_v15  ;;  %v111_v24 = vand.u32 4294901760, %v941_v16  ;;  %166 = vmatpush.msra.mxu2 %v938_v15  ;;  %v117_v25 = vand.u32 4294901760, %v944_v17  ;;  %v969_v28 = vsub.f32 %v31_v13, %v947_v18  ;;  %v29_v35 = vld [vmem:[%s1356_s0] sm:$0xff] }
   0x9   :  { %v123_v26 = vand.u32 4294901760, %v950_v19  ;;  %205 = vmatpush.msra.mxu3 %v911_v5  ;;  %v129_v27 = vand.u32 4294901760, %v953_v20  ;;  %v135_v32 = vand.u32 4294901760, %v956_v21  ;;  %v988_v34 = vsub.f32 %v30_v14, %v958_v22  ;;  %v53_v38 = vld [vmem:[%s1359_s3 + $0x78] sm:$0xff]  ;;  %v52_v39 = vld [vmem:[%s1359_s3 + $0x70] sm:$0xff]  ;;  %v51_v42 = vld [vmem:[%s1359_s3 + $0x68] sm:$0xff] }
   0xa   :  { %v106_v29 = vsub.f32 %v938_v15, %v105_v23  ;;  %75 = vmatpush.msra.mxu0 %v913_v6  ;;  %v112_v30 = vsub.f32 %v941_v16, %v111_v24  ;;  %v118_v31 = vsub.f32 %v944_v17, %v117_v25  ;;  %169 = vmatpush.msra.mxu2 %v941_v16  ;;  %vm58_vm0 = vcmask 523264   ;;  %v50_v43 = vld [vmem:[%s1359_s3 + $0x60] sm:$0xff]  ;;  %v49_v44 = vld [vmem:[%s1359_s3 + $0x58] sm:$0xff]  ;;  %v48_v49 = vld [vmem:[%s1359_s3 + $0x50] sm:$0xff]  ;;  %s815_s30 = sshll.u32 %s1363_s7, 4  ;;  %s816_s30 = int_to_ptr.hbm [resolvable:$true] %s815_s30 }
   0xb   :  { %v124_v33 = vsub.f32 %v950_v19, %v123_v26  ;;  %207 = vmatpush.msra.mxu3 %v913_v6  ;;  %v130_v40 = vsub.f32 %v953_v20, %v129_v27  ;;  %v141_v41 = vand.u32 4294901760, %v969_v28  ;;  %v136_v46 = vsub.f32 %v956_v21, %v135_v32  ;;  %v47_v58 = vld [vmem:[%s1359_s3 + $0x48] sm:$0xff] }
   0xc   :  { %v107_v36 = vand.u32 4294901760, %v106_v29  ;;  %v113_v37 = vand.u32 4294901760, %v112_v30  ;;  %77 = vmatpush.msra.mxu0 %v924_v10  ;;  %172 = vmatpush.msra.mxu2 %v944_v17  ;;  %v119_v45 = vand.u32 4294901760, %v118_v31  ;;  %v60_v47 = vsel %vm58_vm0, %v29_v35, 0  ;;  %v46_v35 = vld [vmem:[%s1359_s3 + $0x40] sm:$0xff] }
   0xd   :  { %209 = vmatpush.msra.mxu3 %v924_v10  ;;  %v1020_v48 = vand.u32 4294901760, %v53_v38  ;;  %v125_v50 = vand.u32 4294901760, %v124_v33  ;;  %v147_v51 = vand.u32 4294901760, %v988_v34  ;;  %v1028_v52 = vand.u32 4294901760, %v60_v47 }
   0xe   :  { %108 = vmatpush.msra.mxu1 %v107_v36  ;;  %79 = vmatpush.msra.mxu0 %v926_v11  ;;  %v1030_v53 = vand.u32 4294901760, %v52_v39  ;;  %v1036_v55 = vand.u32 4294901760, %v51_v42  ;;  %v1038_v56 = vand.u32 4294901760, %v50_v43  ;;  %v1040_v57 = vand.u32 4294901760, %v49_v44 }
   0xf   :  { %175 = vmatpush.msra.mxu2 %v950_v19  ;;  %211 = vmatpush.msra.mxu3 %v926_v11  ;;  %v1034_v54 = vsub.f32 %v53_v38, %v1020_v48  ;;  %v142_v59 = vsub.f32 %v969_v28, %v141_v41  ;;  %v87_v60 = vsub.f32 %v60_v47, %v1028_v52  ;;  %v1054_v62 = vand.u32 4294901760, %v48_v49  ;;  %v43_v47 = vld [vmem:[%s1359_s3 + $0x28] sm:$0xff] }
  0x10   :  { %114 = vmatpush.msra.mxu1 %v113_v37  ;;  %81 = vmatpush.msra.mxu0 %v928_v12  ;;  %v1052_v61 = vsub.f32 %v52_v39, %v1030_v53  ;;  %v131_v63 = vand.u32 4294901760, %v130_v40  ;;  %v1059_v1 = vsub.f32 %v51_v42, %v1036_v55  ;;  %v1062_v2 = vsub.f32 %v50_v43, %v1038_v56  ;;  %v44_v42 = vld [vmem:[%s1359_s3 + $0x30] sm:$0xff] }
  0x11   :  { %178 = vmatpush.msra.mxu2 %v953_v20  ;;  %213 = vmatpush.msra.mxu3 %v928_v12  ;;  %v347_v0 = vand.u32 4294901760, %v1034_v54  ;;  %v137_v3 = vand.u32 4294901760, %v136_v46  ;;  %v88_v7 = vand.u32 4294901760, %v87_v60  ;;  %v1067_v9 = vand.u32 4294901760, %v47_v58  ;;  %v40_v20 = vld [vmem:[%s1359_s3 + $0x10] sm:$0xff] }
  0x12   :  { %120 = vmatpush.msra.mxu1 %v119_v45  ;;  %83 = vmatpush.msra.mxu0 %v947_v18  ;;  %v353_v8 = vand.u32 4294901760, %v1052_v61  ;;  %v148_v13 = vsub.f32 %v988_v34, %v147_v51  ;;  %v359_v29 = vand.u32 4294901760, %v1059_v1  ;;  %v1078_v30 = vsub.f32 %v49_v44, %v1040_v57 }
  0x13   :  { %181 = vmatpush.msra.mxu2 %v956_v21  ;;  %215 = vmatpush.msra.mxu3 %v947_v18  ;;  %v348_v14 = vsub.f32 %v1034_v54, %v347_v0  ;;  %v89_v31 = vsub.f32 %v87_v60, %v88_v7  ;;  %v1084_v33 = vsub.f32 %v48_v49, %v1054_v62  ;;  %v143_v36 = vand.u32 4294901760, %v142_v59  ;;  %v42_v59 = vld [vmem:[%s1359_s3 + $0x20] sm:$0xff]  ;;  %v39_v21 = vld [vmem:[%s1359_s3 + $0x8] sm:$0xff] }
  0x14   :  { %126 = vmatpush.msra.mxu1 %v125_v50  ;;  %85 = vmatpush.msra.mxu0 %v958_v22  ;;  %v354_v37 = vsub.f32 %v1052_v61, %v353_v8  ;;  %v365_v15 = vand.u32 4294901760, %v1062_v2  ;;  %v1101_v40 = vsub.f32 %v47_v58, %v1067_v9  ;;  %v149_v43 = vand.u32 4294901760, %v148_v13 }
  0x15   :  { %184 = vmatpush.msra.mxu2 %v969_v28  ;;  %217 = vmatpush.msra.mxu3 %v958_v22  ;;  %v90_v38 = vand.u32 4294901760, %v89_v31  ;;  %v349_v39 = vand.u32 4294901760, %v348_v14  ;;  %v360_v44 = vsub.f32 %v1059_v1, %v359_v29  ;;  %v371_v16 = vand.u32 4294901760, %v1078_v30 }
  0x16   :  { %236 = vmatpush.msrb.mxu0 %v105_v23  ;;  %132 = vmatpush.msra.mxu1 %v131_v63  ;;  %v45_v23 = vld [vmem:[%s1359_s3 + $0x38] sm:$0xff]  ;;  %v377_v45 = vand.u32 4294901760, %v1084_v33  ;;  %v355_v49 = vand.u32 4294901760, %v354_v37  ;;  %v366_v50 = vsub.f32 %v1062_v2, %v365_v15  ;;  %v1126_v17 = vand.u32 4294901760, %v44_v42 }
  0x17   :  { %187 = vmatpush.msra.mxu2 %v988_v34  ;;  %221 = vmatmul.f32.vlgmr.msra.gmra.mxu3 %v88_v7  ;;  %v1115_v46 = vand.u32 4294901760, %v45_v23  ;;  %v372_v63 = vsub.f32 %v1078_v30, %v371_v16  ;;  %v1141_v19 = vand.u32 4294901760, %v43_v47  ;;  %v41_v7 = vld [vmem:[%s1359_s3 + $0x18] sm:$0xff]  ;;  %vm806_vm1 = vcmask 57344  }
  0x18   :  { %240 = vmatpush.msrb.mxu0 %v111_v24  ;;  %138 = vmatpush.msra.mxu1 %v137_v3  ;;  %v1110_v24 = vand.u32 4294901760, %v46_v35  ;;  %v367_v13 = vand.u32 4294901760, %v366_v50  ;;  %v1155_v31 = vsub.f32 %v44_v42, %v1126_v17 }
  0x19   :  { %190 = vmatmul.f32.vlgmr.msra.gmra.mxu2 %v87_v60  ;;  %91 = vmatmul.f32.vlgmr.msra.gmra.mxu0 %v90_v38  ;;  %v361_v60 = vand.u32 4294901760, %v360_v44  ;;  %v1139_v3 = vsub.f32 %v45_v23, %v1115_v46  ;;  %v1171_v37 = vsub.f32 %v43_v47, %v1141_v19  ;;  %v1173_v23 = vand.u32 4294901760, %v41_v7 }
  0x1a   :  { %244 = vmatpush.msrb.mxu0 %v117_v25  ;;  %144 = vmatpush.msra.mxu1 %v143_v36  ;;  %v1124_v58 = vsub.f32 %v46_v35, %v1110_v24  ;;  %v383_v25 = vand.u32 4294901760, %v1101_v40  ;;  %v373_v35 = vand.u32 4294901760, %v372_v63 }
  0x1b   :  { %350 = vmatpush.msrb.mxu3 %v349_v39  ;;  %305 = vmatpush.msrb.mxu2 %v1020_v48  ;;  %v395_v36 = vand.u32 4294901760, %v1139_v3  ;;  %v401_v39 = vand.u32 4294901760, %v1155_v31  ;;  %v1203_v44 = vsub.f32 %v41_v7, %v1173_v23 }
  0x1c   :  { %248 = vmatpush.msrb.mxu0 %v123_v26  ;;  %150 = vmatpush.msra.mxu1 %v149_v43  ;;  %v378_v26 = vsub.f32 %v1084_v33, %v377_v45  ;;  %v389_v14 = vand.u32 4294901760, %v1124_v58  ;;  %v407_v43 = vand.u32 4294901760, %v1171_v37 }
  0x1d   :  { %152 = vmatmul.f32.vlgmr.msra.gmra.mxu1 %v1028_v52  ;;  %356 = vmatpush.msrb.mxu3 %v355_v49  ;;  %v396_v42 = vsub.f32 %v1139_v3, %v395_v36  ;;  %v402_v47 = vsub.f32 %v1155_v31, %v401_v39 }
  0x1e   :  { %279 = vmatpush.msrb.mxu1 %v909_v4  ;;  %252 = vmatpush.msrb.mxu0 %v129_v27  ;;  %v1157_v4 = vand.u32 4294901760, %v42_v59  ;;  %v384_v27 = vsub.f32 %v1101_v40, %v383_v25  ;;  %v390_v38 = vsub.f32 %v1124_v58, %v389_v14 }
  0x1f   :  { %362 = vmatpush.msrb.mxu3 %v361_v60  ;;  %307 = vmatpush.msrb.mxu2 %v1030_v53  ;;  %v419_v60 = vand.u32 4294901760, %v1203_v44 }
  0x20   :  { %281 = vmatpush.msrb.mxu1 %v911_v5  ;;  %256 = vmatpush.msrb.mxu0 %v135_v32  ;;  %v1178_v5 = vand.u32 4294901760, %v40_v20  ;;  %v379_v32 = vand.u32 4294901760, %v378_v26  ;;  %v385_v28 = vand.u32 4294901760, %v384_v27 }
  0x21   :  { %368 = vmatpush.msrb.mxu3 %v367_v13  ;;  %309 = vmatpush.msrb.mxu2 %v1036_v55 }
  0x22   :  { %283 = vmatpush.msrb.mxu1 %v913_v6  ;;  %260 = vmatpush.msrb.mxu0 %v141_v41  ;;  %v1189_v6 = vsub.f32 %v42_v59, %v1157_v4  ;;  %v38_v41 = vld [vmem:[%s1359_s3] sm:$0xff]  ;;  %v1210_v34 = vsub.f32 %v40_v20, %v1178_v5  ;;  %v408_v59 = vsub.f32 %v1171_v37, %v407_v43 }
  0x23   :  { %374 = vmatpush.msrb.mxu3 %v373_v35  ;;  %311 = vmatpush.msrb.mxu2 %v1038_v56  ;;  %v1217_v50 = vand.u32 4294901760, %v38_v41  ;;  %v420_v20 = vsub.f32 %v1203_v44, %v419_v60 }
  0x24   :  { %285 = vmatpush.msrb.mxu1 %v924_v10  ;;  %264 = vmatpush.msrb.mxu0 %v147_v51  ;;  %v1205_v10 = vand.u32 4294901760, %v39_v21  ;;  %v391_v51 = vand.u32 4294901760, %v390_v38  ;;  %v413_v49 = vand.u32 4294901760, %v1189_v6  ;;  %v425_v7 = vand.u32 4294901760, %v1210_v34 }
  0x25   :  { %266 = vmatmul.f32.vlgmr.msrb.gmra.mxu0 %v1028_v52  ;;  %380 = vmatpush.msrb.mxu3 %v379_v32  ;;  %v1237_v13 = vsub.f32 %v38_v41, %v1217_v50 }
  0x26   :  { %287 = vmatpush.msrb.mxu1 %v926_v11  ;;  %448 = vmatpush.msra.mxu0 %v1034_v54  ;;  %v397_v11 = vand.u32 4294901760, %v396_v42  ;;  %v1227_v63 = vsub.f32 %v39_v21, %v1205_v10  ;;  %v414_v26 = vsub.f32 %v1189_v6, %v413_v49  ;;  %v421_v21 = vand.u32 4294901760, %v420_v20 }
  0x27   :  { %313 = vmatpush.msrb.mxu2 %v1040_v57  ;;  %386 = vmatpush.msrb.mxu3 %v385_v28 }
  0x28   :  { %289 = vmatpush.msrb.mxu1 %v928_v12  ;;  %451 = vmatpush.msra.mxu0 %v1052_v61  ;;  %v403_v12 = vand.u32 4294901760, %v402_v47  ;;  %v431_v27 = vand.u32 4294901760, %v1227_v63  ;;  %v415_v35 = vand.u32 4294901760, %v414_v26 }
  0x29   :  { %315 = vmatpush.msrb.mxu2 %v1054_v62  ;;  %392 = vmatpush.msrb.mxu3 %v391_v51 }
  0x2a   :  { %291 = vmatpush.msrb.mxu1 %v947_v18  ;;  %454 = vmatpush.msra.mxu0 %v1059_v1  ;;  %v409_v18 = vand.u32 4294901760, %v408_v59  ;;  %v432_v32 = vsub.f32 %v1227_v63, %v431_v27 }
  0x2b   :  { %317 = vmatpush.msrb.mxu2 %v1067_v9  ;;  %398 = vmatpush.msrb.mxu3 %v397_v11 }
  0x2c   :  { %293 = vmatpush.msrb.mxu1 %v958_v22  ;;  %v426_v22 = vsub.f32 %v1210_v34, %v425_v7  ;;  %457 = vmatpush.msra.mxu0 %v1062_v2  ;;  %v433_v41 = vand.u32 4294901760, %v432_v32 }
  0x2d   :  { %295 = vmatmul.f32.vlgmr.msrb.gmra.mxu1 %v1028_v52  ;;  %319 = vmatpush.msrb.mxu2 %v1110_v24  ;;  %v437_v52 = vand.u32 4294901760, %v1237_v13 }
  0x2e   :  { %501 = vmatpush.msra.mxu1 %v1020_v48  ;;  %404 = vmatpush.msrb.mxu3 %v403_v12  ;;  %v427_v38 = vand.u32 4294901760, %v426_v22 }
  0x2f   :  { %321 = vmatpush.msrb.mxu2 %v1115_v46  ;;  %460 = vmatpush.msra.mxu0 %v1078_v30  ;;  %v438_v28 = vsub.f32 %v1237_v13, %v437_v52 }
  0x30   :  { %503 = vmatpush.msra.mxu1 %v1030_v53  ;;  %410 = vmatpush.msrb.mxu3 %v409_v18 }
  0x31   :  { %323 = vmatpush.msrb.mxu2 %v1126_v17  ;;  %463 = vmatpush.msra.mxu0 %v1084_v33  ;;  %v439_v42 = vand.u32 4294901760, %v438_v28 }
  0x32   :  { %505 = vmatpush.msra.mxu1 %v1036_v55  ;;  %416 = vmatpush.msrb.mxu3 %v415_v35 }
  0x33   :  { %325 = vmatpush.msrb.mxu2 %v1141_v19  ;;  %466 = vmatpush.msra.mxu0 %v1101_v40 }
  0x34   :  { %507 = vmatpush.msra.mxu1 %v1038_v56  ;;  %422 = vmatpush.msrb.mxu3 %v421_v21 }
  0x35   :  { %327 = vmatpush.msrb.mxu2 %v1157_v4  ;;  %469 = vmatpush.msra.mxu0 %v1124_v58 }
  0x36   :  { %509 = vmatpush.msra.mxu1 %v1040_v57  ;;  %428 = vmatpush.msrb.mxu3 %v427_v38 }
  0x37   :  { %329 = vmatpush.msrb.mxu2 %v1173_v23  ;;  %472 = vmatpush.msra.mxu0 %v1139_v3 }
  0x38   :  { %511 = vmatpush.msra.mxu1 %v1054_v62  ;;  %434 = vmatpush.msrb.mxu3 %v433_v41 }
  0x39   :  { %331 = vmatpush.msrb.mxu2 %v1178_v5  ;;  %475 = vmatpush.msra.mxu0 %v1155_v31  ;;  %v647_v31 = vld [vmem:[#allocation2] sm:$0x1] }
  0x3a   :  { %513 = vmatpush.msra.mxu1 %v1067_v9  ;;  %440 = vmatpush.msrb.mxu3 %v439_v42 }
  0x3b   :  { %333 = vmatpush.msrb.mxu2 %v1205_v10  ;;  %478 = vmatpush.msra.mxu0 %v1171_v37 }
  0x3c   :  { %609 = vmatpush.msra.mxu3 %v1020_v48  ;;  %515 = vmatpush.msra.mxu1 %v1110_v24  ;;  %v827_v48 = vld [vmem:[%s1358_s2] ss:$0 sm:$0xff] }
  0x3d   :  { %335 = vmatpush.msrb.mxu2 %v1217_v50  ;;  %481 = vmatpush.msra.mxu0 %v1189_v6 }
  0x3e   :  { %611 = vmatpush.msra.mxu3 %v1030_v53  ;;  %517 = vmatpush.msra.mxu1 %v1115_v46 }
  0x3f   :  { %542 = vmatpush.msra.mxu2 %v347_v0  ;;  %484 = vmatpush.msra.mxu0 %v1203_v44 }
  0x40   :  { %613 = vmatpush.msra.mxu3 %v1036_v55  ;;  %519 = vmatpush.msra.mxu1 %v1126_v17 }
  0x41   :  { %546 = vmatpush.msra.mxu2 %v353_v8  ;;  %487 = vmatpush.msra.mxu0 %v1210_v34 }
  0x42   :  { %615 = vmatpush.msra.mxu3 %v1038_v56  ;;  %521 = vmatpush.msra.mxu1 %v1141_v19 }
  0x43   :  { %550 = vmatpush.msra.mxu2 %v359_v29  ;;  %490 = vmatpush.msra.mxu0 %v1227_v63 }
  0x44   :  { %617 = vmatpush.msra.mxu3 %v1040_v57  ;;  %523 = vmatpush.msra.mxu1 %v1157_v4 }
  0x45   :  { %554 = vmatpush.msra.mxu2 %v365_v15  ;;  %493 = vmatpush.msra.mxu0 %v1237_v13 }
  0x46   :  { %619 = vmatpush.msra.mxu3 %v1054_v62  ;;  %525 = vmatpush.msra.mxu1 %v1173_v23 }
  0x47   :  { %558 = vmatpush.msra.mxu2 %v371_v16 }
  0x48   :  { %621 = vmatpush.msra.mxu3 %v1067_v9  ;;  %527 = vmatpush.msra.mxu1 %v1178_v5 }
  0x49   :  { %562 = vmatpush.msra.mxu2 %v377_v45  ;;  %v828_v45 = vld [vmem:[%s1360_s4] ss:$0 sm:$0xff]  ;;  %s856_s4 = smov [#allocation3]  }
  0x4a   :  { %623 = vmatpush.msra.mxu3 %v1110_v24  ;;  %529 = vmatpush.msra.mxu1 %v1205_v10  ;;  %v646_v24 = vld [vmem:[%s1361_s5] sm:$0x1]  ;;  %s813_s5 = sshll.u32 %s856_s4, 4  ;;  %s814_s5 = int_to_ptr.vmem [resolvable:$true] %s813_s5 }
  0x4b   :  { %566 = vmatpush.msra.mxu2 %v383_v25 }
  0x4c   :  { %625 = vmatpush.msra.mxu3 %v1115_v46  ;;  %531 = vmatpush.msra.mxu1 %v1217_v50  ;;  %v655_v46 = vsel %vm58_vm0, %v646_v24, 0 }
  0x4d   :  { %570 = vmatpush.msra.mxu2 %v389_v14  ;;  %v677_v25 = vand.u32 4294901760, %v655_v46  ;;  %v855_v14 = vmov 0  }
  0x4e   :  { %627 = vmatpush.msra.mxu3 %v1126_v17  ;;  %826 = vset.pattern.permute.xlu0 %v855_v14 }
  0x4f   :  { %574 = vmatpush.msra.mxu2 %v395_v36  ;;  %650 = vperm.xlu0 %826, %v647_v31   ;;  %v678_v36 = vsub.f32 %v655_v46, %v677_v25 }
  0x50   :  { %629 = vmatpush.msra.mxu3 %v1141_v19 }
  0x51   :  { %578 = vmatpush.msra.mxu2 %v401_v39 }
  0x52   :  { %631 = vmatpush.msra.mxu3 %v1157_v4 }
  0x53   :  { %582 = vmatpush.msra.mxu2 %v407_v43  ;;  %v679_v43 = vand.u32 4294901760, %v678_v36 }
  0x54   :  { %633 = vmatpush.msra.mxu3 %v1173_v23 }
  0x55   :  { %586 = vmatpush.msra.mxu2 %v413_v49  ;;  %v680_v51 = vsub.f32 %v678_v36, %v679_v43 }
  0x56   :  { %635 = vmatpush.msra.mxu3 %v1178_v5 }
  0x57   :  { %590 = vmatpush.msra.mxu2 %v419_v60 }
  0x58   :  { %637 = vmatpush.msra.mxu3 %v1205_v10 }
  0x59   :  { %594 = vmatpush.msra.mxu2 %v425_v7 }
  0x5a   :  { %639 = vmatpush.msra.mxu3 %v1217_v50  ;;  %v681_v50 = vand.u32 4294901760, %v680_v51 }
  0x5b   :  { %598 = vmatpush.msra.mxu2 %v431_v27 }
  0x5d   :  { %602 = vmatpush.msra.mxu2 %v437_v52 }
  0x96   :  { %v92_v53 = vpop.f32.mrf.mxu0 }
  0x97   :  { %v93_v54 = vadd.f32 %v827_v48, %v92_v53 }
  0x9a   :  { %v153_v55 = vpop.f32.mrf.mxu1  ;;  %v222_v62 = vpop.f32.mrf.mxu3 }
  0x9b   :  { %v154_v57 = vadd.f32 %v153_v55, %v93_v54 }
  0x9c   :  { %v191_v56 = vpop.f32.mrf.mxu2 }
  0x9d   :  { %v192_v61 = vadd.f32 %v191_v56, %v154_v57 }
  0x9f   :  { %v223_v0 = vadd.f32 %v222_v62, %v192_v61 }
  0xa2   :  { %v267_v1 = vpop.f32.mrf.mxu0 }
  0xa3   :  { %v268_v2 = vadd.f32 %v267_v1, %v223_v0 }
  0xaa   :  { %v296_v8 = vpop.f32.mrf.mxu1 }
  0xab   :  { %v297_v9 = vadd.f32 %v296_v8, %v268_v2 }
  0xad   :  { %v299_v29 = vmax.f32 %v297_v9, 0.0 }
  0xaf   :  { %v336_v30 = vand.u32 4294901760, %v299_v29 }
  0xb1   :  { %v337_v33 = vsub.f32 %v299_v29, %v336_v30  ;;  %442 = vmatmul.f32.vlgmr.msrb.gmra.mxu3 %v336_v30 }
  0xb3   :  { %496 = vmatmul.f32.vlgmr.msra.gmra.mxu0 %v337_v33  ;;  %v338_v15 = vand.u32 4294901760, %v337_v33 }
  0xb5   :  { %535 = vmatmul.f32.vlgmr.msra.gmra.mxu1 %v338_v15  ;;  %v339_v40 = vsub.f32 %v337_v33, %v338_v15 }
  0xb7   :  { %v340_v16 = vand.u32 4294901760, %v339_v40 }
  0xb9   :  { %341 = vmatmul.f32.vlgmr.msrb.gmra.mxu2 %v340_v16  ;;  %641 = vmatmul.f32.vlgmr.msra.gmra.mxu3 %v336_v30 }
  0xc1   :  { %604 = vmatmul.f32.vlgmr.msra.gmra.mxu2 %v336_v30  ;;  %v651_v26 = vpop.permute.xlu0 %650 }
  0xc2   :  { %v653_v7 = vperm.slane %v651_v26, 0 }
 0x130   :  { %v497_v4 = vpop.f32.mrf.mxu0 }
 0x132   :  { %v536_v23 = vpop.f32.mrf.mxu1 }
 0x134   :  { %v443_v58 = vpop.f32.mrf.mxu3 }
 0x13c   :  { %v342_v17 = vpop.f32.mrf.mxu2  ;;  %v642_v44 = vpop.f32.mrf.mxu3 }
 0x13d   :  { %v343_v3 = vadd.f32 %v828_v45, %v342_v17 }
 0x13f   :  { %v444_v19 = vadd.f32 %v443_v58, %v343_v3 }
 0x141   :  { %v498_v37 = vadd.f32 %v497_v4, %v444_v19 }
 0x143   :  { %v537_v5 = vadd.f32 %v536_v23, %v498_v37 }
 0x144   :  { %v605_v39 = vpop.f32.mrf.mxu2 }
 0x145   :  { %v606_v6 = vadd.f32 %v605_v39, %v537_v5 }
 0x147   :  { %v643_v10 = vadd.f32 %v642_v44, %v606_v6 }
 0x149   :  { %v645_v34 = vmax.f32 %v643_v10, 0.0 }
 0x14b   :  { %v658_v47 = vsel %vm58_vm0, %v645_v34, 0 }
 0x14c   :  { %v675_v49 = vand.u32 4294901760, %v658_v47 }
 0x14e   :  { %v702_v11 = vsub.f32 %v658_v47, %v675_v49  ;;  %676 = vmatpush.xpose.msrb.mxu0 %v675_v49 }
 0x150   :  { %v703_v59 = vand.u32 4294901760, %v702_v11 }
 0x151   :  { %682 = vmatmul.f32.vlgmr.msrb.gmra.mxu0 %v681_v50 }
 0x152   :  { %729 = vmatpush.xpose.msra.mxu0 %v702_v11  ;;  %v704_v60 = vsub.f32 %v702_v11, %v703_v59 }
 0x154   :  { %v705_v63 = vand.u32 4294901760, %v704_v60 }
 0x156   :  { %778 = vmatpush.xpose.msrb.mxu0 %v703_v59  ;;  %706 = vmatpush.xpose.msrb.mxu1 %v705_v63 }
 0x159   :  { %708 = vmatmul.f32.vlgmr.msrb.gmra.mxu1 %v677_v25  ;;  %732 = vmatmul.f32.vlgmr.msra.gmra.mxu0 %v678_v36 }
 0x15a   :  { %752 = vmatpush.xpose.msra.mxu1 %v675_v49 }
 0x15e   :  { %800 = vmatpush.xpose.msrb.mxu1 %v675_v49 }
 0x161   :  { %756 = vmatmul.f32.vlgmr.msra.gmra.mxu1 %v679_v43  ;;  %780 = vmatmul.f32.vlgmr.msrb.gmra.mxu0 %v677_v25 }
 0x169   :  { %802 = vmatmul.f32.vlgmr.msrb.gmra.mxu1 %v677_v25 }
 0x1ce   :  { %v683_v12 = vpop.f32.mrf.mxu0 }
 0x1cf   :  { %v684_v18 = vadd.f32 %v683_v12, %v653_v7 }
 0x1d6   :  { %v709_v13 = vpop.f32.mrf.mxu1  ;;  %v733_v20 = vpop.f32.mrf.mxu0 }
 0x1d7   :  { %v710_v27 = vadd.f32 %v709_v13, %v684_v18 }
 0x1d9   :  { %v734_v22 = vadd.f32 %v733_v20, %v710_v27 }
 0x1de   :  { %v757_v35 = vpop.f32.mrf.mxu1  ;;  %v781_v21 = vpop.f32.mrf.mxu0 }
 0x1df   :  { %v758_v52 = vadd.f32 %v757_v35, %v734_v22 }
 0x1e1   :  { %v782_v32 = vadd.f32 %v781_v21, %v758_v52 }
 0x1e6   :  { %v803_v38 = vpop.f32.mrf.mxu1 }
 0x1e7   :  { %v804_v28 = vadd.f32 %v803_v38, %v782_v32 }
 0x1e9   :  { %807 = vst.msk [vmem:[#allocation3] sm:$0x1] %vm806_vm1, %v804_v28 }
 0x1ea   :  { %818 = dma.vmem_to_hbm [thread:$0]  %s814_s5, 16, %s816_s30, [#allocation4]  }
 0x1eb   :  { %853 = dma.done.wait [#allocation4], 16  }
 0x1ec   :  { %854 = vsyncadd [#allocation4], 4294967280 }
 0x1ed   :  { %823 = vsyncpa [#allocation4], 1 }

</bundles_post_ra>
